<compile_context>
chip_gen: v6e
topology: v6e:2x2x1
jax: 0.10.0
libtpu: 0.0.40
codegen_flags: <defaults>
</compile_context>

<pallas_src>
import random
import functools

import jax
import jax.numpy as jnp
from jax import lax
from jax.experimental import pallas as pl
from jax.experimental.pallas import tpu as pltpu


def _round_up(n, m):
    return ((n + m - 1) // m) * m


def _dynamic_net_kernel(n_mid_ref, x_ref, w_in_ref, b_h_ref, w_mid_ref,
                        w_out_ref, b_out_ref, o_ref):
    # ---- input linear + ReLU (MXU matmul in bf16, f32 accumulation) ----
    x = x_ref[...].astype(jnp.bfloat16)
    h = jnp.dot(x, w_in_ref[...],
                preferred_element_type=jnp.float32) + b_h_ref[0:1, :]
    h = jnp.maximum(h, 0.0)

    # ---- middle linear, reused n_mid (runtime 0..3) times ----
    # Weight load hoisted; bias stays (1, H_pad) -> implicit sublane broadcast
    # in the add (no materialized (tile_n, H_pad) buffer).
    w_mid = w_mid_ref[...]
    b_mid = b_h_ref[1:2, :]

    def mid(hc):
        hm = jnp.dot(hc.astype(jnp.bfloat16), w_mid,
                     preferred_element_type=jnp.float32) + b_mid
        return jnp.maximum(hm, 0.0)

    # Statically unrolled 0/1/2/3-application branches selected by the runtime
    # scalar (nested 2-way lax.cond == lax.switch); n > 3 clamps to 3.
    n = n_mid_ref[0]
    h = lax.cond(
        n < 2,
        lambda hh: lax.cond(n == 1, mid, lambda a: a, hh),
        lambda hh: lax.cond(n == 2,
                            lambda a: mid(mid(a)),
                            lambda a: mid(mid(mid(a))),
                            hh),
        h)

    # ---- output linear (no activation); direct unpadded (tile_n, D_out) store
    y = jnp.dot(h.astype(jnp.bfloat16), w_out_ref[...],
                preferred_element_type=jnp.float32) + b_out_ref[...]
    o_ref[...] = y.astype(o_ref.dtype)
    # TODO(synk): on v5e (1 store slot, lowest HBM BW) a bf16 lane-dense padded
    # store may beat this masked narrow store; benchmark per generation.


def prepare_params(params, weight_dtype=jnp.bfloat16):
    """One-time (offline) conversion of PyTorch-layout params to kernel layout.

    Transposes (out, in) -> (in, out), zero-pads H up to a multiple of 128 for
    lane-dense hidden tiles, downcasts weights to bf16 for the MXU, and stacks
    the two H-wide biases into one operand. D_in and D_out stay unpadded so the
    input enters and the output leaves at natural width (no extra HBM passes).
    """
    H, D_in = params["w_in"].shape
    D_out = params["w_out"].shape[0]
    H_pad = _round_up(H, 128)

    def pad2(a, rows, cols):
        return jnp.pad(a, ((0, rows - a.shape[0]), (0, cols - a.shape[1])))

    biases_h = jnp.stack([
        jnp.pad(params["b_in"], (0, H_pad - H)),
        jnp.pad(params["b_mid"], (0, H_pad - H)),
    ]).astype(jnp.float32)                                     # (2, H_pad)

    prepped = dict(
        w_in=pad2(params["w_in"].T, D_in, H_pad).astype(weight_dtype),
        biases_h=biases_h,
        w_mid=pad2(params["w_mid"].T, H_pad, H_pad).astype(weight_dtype),
        w_out=pad2(params["w_out"].T, H_pad, D_out).astype(weight_dtype),
        b_out=params["b_out"].reshape(1, D_out).astype(jnp.float32),
    )
    return prepped


def _choose_tile_n(N):
    """Batch tile: big (<=2048) at large N, ~N/2 at moderate N so the grid has
    >= 2 parallel steps (both v7x TensorCores active)."""
    n8 = _round_up(max(N, 1), 8)
    max_tile = 2048
    if n8 <= 8:
        return 8
    if n8 <= 2 * max_tile:
        return min(_round_up(pl.cdiv(n8, 2), 8), max_tile)
    return max_tile


@jax.jit
def _dynamic_net_jit(x, n_mid, w_in, biases_h, w_mid, w_out, b_out):
    N, D_in = x.shape
    H_pad = w_in.shape[1]
    D_out = w_out.shape[1]

    tile_n = _choose_tile_n(N)
    grid = (pl.cdiv(N, tile_n),)

    def const(shape):
        return pl.BlockSpec(shape, lambda i: (0, 0))

    y = pl.pallas_call(
        _dynamic_net_kernel,
        out_shape=jax.ShapeDtypeStruct((N, D_out), jnp.float32),
        grid=grid,
        in_specs=[
            pl.BlockSpec(memory_space=pltpu.MemorySpace.SMEM),  # n_mid (i32[1])
            pl.BlockSpec((tile_n, D_in), lambda i: (i, 0)),     # x rows
            const((D_in, H_pad)),                               # input weight
            const((2, H_pad)),                                  # b_in / b_mid
            const((H_pad, H_pad)),                              # middle weight
            const((H_pad, D_out)),                              # output weight
            const((1, D_out)),                                  # output bias
        ],
        out_specs=pl.BlockSpec((tile_n, D_out), lambda i: (i, 0)),
        compiler_params=pltpu.CompilerParams(
            dimension_semantics=("parallel",),
            vmem_limit_bytes=32 * 1024 * 1024),
    )(n_mid, x, w_in, biases_h, w_mid, w_out, b_out)
    return y


def dynamic_net_forward(x, prepped, num_middle):
    """x: (N, D_in) f32.  prepped: output of prepare_params.  num_middle: int.

    num_middle is passed as a runtime int32 (SMEM scalar) so a new random draw
    does NOT trigger a Mosaic recompile.
    """
    n_mid = jnp.asarray([num_middle], dtype=jnp.int32)
    return _dynamic_net_jit(x, n_mid, **prepped)


def _reference_forward(x, params, num_middle):
    h = jnp.maximum(x @ params["w_in"].T + params["b_in"], 0.0)
    for _ in range(num_middle):
        h = jnp.maximum(h @ params["w_mid"].T + params["b_mid"], 0.0)
    return h @ params["w_out"].T + params["b_out"]


if __name__ == "__main__":
    # Small shapes consistent with the module: x = randn(N, D_in)
    N, D_in, H, D_out = 8, 32, 64, 16

    key = jax.random.PRNGKey(0)
    kx, k1, k2, k3, k4, k5, k6, kx2 = jax.random.split(key, 8)

    x = jax.random.normal(kx, (N, D_in), dtype=jnp.float32)

    # Deterministic synthetic parameters (PyTorch nn.Linear layout: (out, in)).
    def init_linear(kw, kb, fan_in, fan_out):
        bound = 1.0 / jnp.sqrt(jnp.float32(fan_in))
        w = jax.random.uniform(kw, (fan_out, fan_in), jnp.float32, -bound, bound)
        b = jax.random.uniform(kb, (fan_out,), jnp.float32, -bound, bound)
        return w, b

    w_in, b_in = init_linear(k1, k2, D_in, H)
    w_mid, b_mid = init_linear(k3, k4, H, H)
    w_out, b_out = init_linear(k5, k6, H, D_out)
    params = dict(w_in=w_in, b_in=b_in, w_mid=w_mid, b_mid=b_mid,
                  w_out=w_out, b_out=b_out)

    # One-time layout prep (transpose / pad / bf16 / bias stacking) -- offline.
    prepped = prepare_params(params)

    # Dynamic control flow: random 0..3 reuses of the middle layer (host-side
    # draw, runtime scalar -> single compile covers all draws).
    rng = random.Random(0)
    num_middle = rng.randint(0, 3)

    y = dynamic_net_forward(x, prepped, num_middle)
    jax.block_until_ready(y)

    # bf16 MXU operands -> loosened tolerance vs. the pure-f32 reference.
    y_ref = _reference_forward(x, params, num_middle)
    assert y.shape == (N, D_out)
    assert jnp.allclose(y, y_ref, atol=2e-2, rtol=2e-2)

    # Exercise every possible trip count with the SAME compiled kernel.
    for nm in range(4):
        y_nm = dynamic_net_forward(x, prepped, nm)
        y_nm_ref = _reference_forward(x, params, nm)
        assert jnp.allclose(y_nm, y_nm_ref, atol=2e-2, rtol=2e-2)

    # Larger batch: exercises the multi-step "parallel" grid (>= 2 steps so
    # both v7x TensorCores participate; single step on v5e/v6e is also fine).
    N2 = 48
    x2 = jax.random.normal(kx2, (N2, D_in), dtype=jnp.float32)
    y2 = dynamic_net_forward(x2, prepped, 2)
    jax.block_until_ready(y2)
    y2_ref = _reference_forward(x2, params, 2)
    assert y2.shape == (N2, D_out)
    assert jnp.allclose(y2, y2_ref, atol=2e-2, rtol=2e-2)

    print("KERNEL_OK")
</pallas_src>

<mosaic_0001>
module attributes {stable_mosaic.version = 11 : i64} {
  func.func @_dynamic_net_kernel(%arg0: i32, %arg1: memref<1xi32, #tpu.memory_space<smem>>, %arg2: memref<8x32xf32, #tpu.memory_space<vmem>>, %arg3: memref<32x128xbf16, #tpu.memory_space<vmem>>, %arg4: memref<2x128xf32, #tpu.memory_space<vmem>>, %arg5: memref<128x128xbf16, #tpu.memory_space<vmem>>, %arg6: memref<128x16xbf16, #tpu.memory_space<vmem>>, %arg7: memref<1x16xf32, #tpu.memory_space<vmem>>, %arg8: memref<8x16xf32, #tpu.memory_space<vmem>>) attributes {dimension_semantics = [#tpu.dimension_semantics<parallel>], iteration_bounds = array<i64: 1>, scalar_prefetch = 0 : i64, scratch_operands = 0 : i64, tpu.core_type = #tpu.core_type<tc>, window_params = [{transform_indices = @transform_0, window_bounds = array<i64: 1>}, {transform_indices = @transform_1, window_bounds = array<i64: 8, 32>}, {pipeline_mode = #tpu.pipeline_mode<synchronous>, transform_indices = @transform_2, window_bounds = array<i64: 32, 128>}, {pipeline_mode = #tpu.pipeline_mode<synchronous>, transform_indices = @transform_3, window_bounds = array<i64: 2, 128>}, {pipeline_mode = #tpu.pipeline_mode<synchronous>, transform_indices = @transform_4, window_bounds = array<i64: 128, 128>}, {pipeline_mode = #tpu.pipeline_mode<synchronous>, transform_indices = @transform_5, window_bounds = array<i64: 128, 16>}, {pipeline_mode = #tpu.pipeline_mode<synchronous>, transform_indices = @transform_6, window_bounds = array<i64: 1, 16>}, {transform_indices = @transform_7, window_bounds = array<i64: 8, 16>}]} {
    %c0 = arith.constant 0 : index
    %c0_0 = arith.constant 0 : index
    %0 = vector.load %arg2[%c0, %c0_0] : memref<8x32xf32, #tpu.memory_space<vmem>>, vector<8x32xf32>
    %1 = arith.truncf %0 : vector<8x32xf32> to vector<8x32xbf16>
    %c0_1 = arith.constant 0 : index
    %c0_2 = arith.constant 0 : index
    %2 = vector.load %arg3[%c0_1, %c0_2] : memref<32x128xbf16, #tpu.memory_space<vmem>>, vector<32x128xbf16>
    %cst = arith.constant dense<0.000000e+00> : vector<8x128xf32>
    %3 = tpu.matmul %1, %2, %cst {dimension_numbers = #tpu.dot_dimension_numbers<[1], [0], [0], [1], [0, 0, 1, 1], [], []>} : vector<8x32xbf16>, vector<32x128xbf16>, vector<8x128xf32> -> vector<8x128xf32>
    %c0_3 = arith.constant 0 : index
    %c0_4 = arith.constant 0 : index
    %4 = vector.load %arg4[%c0_3, %c0_4] : memref<2x128xf32, #tpu.memory_space<vmem>>, vector<1x128xf32>
    %5 = vector.broadcast %4 : vector<1x128xf32> to vector<8x128xf32>
    %6 = arith.addf %3, %5 : vector<8x128xf32>
    %cst_5 = arith.constant 0.000000e+00 : f32
    %7 = vector.broadcast %cst_5 : f32 to vector<8x128xf32>
    %8 = arith.maximumf %6, %7 : vector<8x128xf32>
    %c0_6 = arith.constant 0 : index
    %c0_7 = arith.constant 0 : index
    %9 = vector.load %arg5[%c0_6, %c0_7] : memref<128x128xbf16, #tpu.memory_space<vmem>>, vector<128x128xbf16>
    %c1 = arith.constant 1 : index
    %c0_8 = arith.constant 0 : index
    %10 = vector.load %arg4[%c1, %c0_8] : memref<2x128xf32, #tpu.memory_space<vmem>>, vector<1x128xf32>
    %c0_9 = arith.constant 0 : index
    %11 = memref.load %arg1[%c0_9] : memref<1xi32, #tpu.memory_space<smem>>
    %c2_i32 = arith.constant 2 : i32
    %12 = arith.cmpi slt, %11, %c2_i32 : i32
    %13 = arith.extui %12 : i1 to i32
    %c0_i32 = arith.constant 0 : i32
    %14 = arith.cmpi ne, %13, %c0_i32 : i32
    %15 = scf.if %14 -> (vector<8x128xf32>) {
      %c1_i32 = arith.constant 1 : i32
      %23 = arith.cmpi eq, %11, %c1_i32 : i32
      %24 = arith.extui %23 : i1 to i32
      %c0_i32_17 = arith.constant 0 : i32
      %25 = arith.cmpi ne, %24, %c0_i32_17 : i32
      %26 = scf.if %25 -> (vector<8x128xf32>) {
        %27 = arith.truncf %8 : vector<8x128xf32> to vector<8x128xbf16>
        %cst_18 = arith.constant dense<0.000000e+00> : vector<8x128xf32>
        %28 = tpu.matmul %27, %9, %cst_18 {dimension_numbers = #tpu.dot_dimension_numbers<[1], [0], [0], [1], [0, 0, 1, 1], [], []>} : vector<8x128xbf16>, vector<128x128xbf16>, vector<8x128xf32> -> vector<8x128xf32>
        %29 = vector.broadcast %10 : vector<1x128xf32> to vector<8x128xf32>
        %30 = arith.addf %28, %29 : vector<8x128xf32>
        %cst_19 = arith.constant 0.000000e+00 : f32
        %31 = vector.broadcast %cst_19 : f32 to vector<8x128xf32>
        %32 = arith.maximumf %30, %31 : vector<8x128xf32>
        scf.yield %32 : vector<8x128xf32>
      } else {
        scf.yield %8 : vector<8x128xf32>
      }
      scf.yield %26 : vector<8x128xf32>
    } else {
      %c2_i32_17 = arith.constant 2 : i32
      %23 = arith.cmpi eq, %11, %c2_i32_17 : i32
      %24 = arith.extui %23 : i1 to i32
      %c0_i32_18 = arith.constant 0 : i32
      %25 = arith.cmpi ne, %24, %c0_i32_18 : i32
      %26 = scf.if %25 -> (vector<8x128xf32>) {
        %27 = arith.truncf %8 : vector<8x128xf32> to vector<8x128xbf16>
        %cst_19 = arith.constant dense<0.000000e+00> : vector<8x128xf32>
        %28 = tpu.matmul %27, %9, %cst_19 {dimension_numbers = #tpu.dot_dimension_numbers<[1], [0], [0], [1], [0, 0, 1, 1], [], []>} : vector<8x128xbf16>, vector<128x128xbf16>, vector<8x128xf32> -> vector<8x128xf32>
        %29 = vector.broadcast %10 : vector<1x128xf32> to vector<8x128xf32>
        %30 = arith.addf %28, %29 : vector<8x128xf32>
        %cst_20 = arith.constant 0.000000e+00 : f32
        %31 = vector.broadcast %cst_20 : f32 to vector<8x128xf32>
        %32 = arith.maximumf %30, %31 : vector<8x128xf32>
        %33 = arith.truncf %32 : vector<8x128xf32> to vector<8x128xbf16>
        %cst_21 = arith.constant dense<0.000000e+00> : vector<8x128xf32>
        %34 = tpu.matmul %33, %9, %cst_21 {dimension_numbers = #tpu.dot_dimension_numbers<[1], [0], [0], [1], [0, 0, 1, 1], [], []>} : vector<8x128xbf16>, vector<128x128xbf16>, vector<8x128xf32> -> vector<8x128xf32>
        %35 = vector.broadcast %10 : vector<1x128xf32> to vector<8x128xf32>
        %36 = arith.addf %34, %35 : vector<8x128xf32>
        %cst_22 = arith.constant 0.000000e+00 : f32
        %37 = vector.broadcast %cst_22 : f32 to vector<8x128xf32>
        %38 = arith.maximumf %36, %37 : vector<8x128xf32>
        scf.yield %38 : vector<8x128xf32>
      } else {
        %27 = arith.truncf %8 : vector<8x128xf32> to vector<8x128xbf16>
        %cst_19 = arith.constant dense<0.000000e+00> : vector<8x128xf32>
        %28 = tpu.matmul %27, %9, %cst_19 {dimension_numbers = #tpu.dot_dimension_numbers<[1], [0], [0], [1], [0, 0, 1, 1], [], []>} : vector<8x128xbf16>, vector<128x128xbf16>, vector<8x128xf32> -> vector<8x128xf32>
        %29 = vector.broadcast %10 : vector<1x128xf32> to vector<8x128xf32>
        %30 = arith.addf %28, %29 : vector<8x128xf32>
        %cst_20 = arith.constant 0.000000e+00 : f32
        %31 = vector.broadcast %cst_20 : f32 to vector<8x128xf32>
        %32 = arith.maximumf %30, %31 : vector<8x128xf32>
        %33 = arith.truncf %32 : vector<8x128xf32> to vector<8x128xbf16>
        %cst_21 = arith.constant dense<0.000000e+00> : vector<8x128xf32>
        %34 = tpu.matmul %33, %9, %cst_21 {dimension_numbers = #tpu.dot_dimension_numbers<[1], [0], [0], [1], [0, 0, 1, 1], [], []>} : vector<8x128xbf16>, vector<128x128xbf16>, vector<8x128xf32> -> vector<8x128xf32>
        %35 = vector.broadcast %10 : vector<1x128xf32> to vector<8x128xf32>
        %36 = arith.addf %34, %35 : vector<8x128xf32>
        %cst_22 = arith.constant 0.000000e+00 : f32
        %37 = vector.broadcast %cst_22 : f32 to vector<8x128xf32>
        %38 = arith.maximumf %36, %37 : vector<8x128xf32>
        %39 = arith.truncf %38 : vector<8x128xf32> to vector<8x128xbf16>
        %cst_23 = arith.constant dense<0.000000e+00> : vector<8x128xf32>
        %40 = tpu.matmul %39, %9, %cst_23 {dimension_numbers = #tpu.dot_dimension_numbers<[1], [0], [0], [1], [0, 0, 1, 1], [], []>} : vector<8x128xbf16>, vector<128x128xbf16>, vector<8x128xf32> -> vector<8x128xf32>
        %41 = vector.broadcast %10 : vector<1x128xf32> to vector<8x128xf32>
        %42 = arith.addf %40, %41 : vector<8x128xf32>
        %cst_24 = arith.constant 0.000000e+00 : f32
        %43 = vector.broadcast %cst_24 : f32 to vector<8x128xf32>
        %44 = arith.maximumf %42, %43 : vector<8x128xf32>
        scf.yield %44 : vector<8x128xf32>
      }
      scf.yield %26 : vector<8x128xf32>
    }
    %16 = arith.truncf %15 : vector<8x128xf32> to vector<8x128xbf16>
    %c0_10 = arith.constant 0 : index
    %c0_11 = arith.constant 0 : index
    %17 = vector.load %arg6[%c0_10, %c0_11] : memref<128x16xbf16, #tpu.memory_space<vmem>>, vector<128x16xbf16>
    %cst_12 = arith.constant dense<0.000000e+00> : vector<8x16xf32>
    %18 = tpu.matmul %16, %17, %cst_12 {dimension_numbers = #tpu.dot_dimension_numbers<[1], [0], [0], [1], [0, 0, 1, 1], [], []>} : vector<8x128xbf16>, vector<128x16xbf16>, vector<8x16xf32> -> vector<8x16xf32>
    %c0_13 = arith.constant 0 : index
    %c0_14 = arith.constant 0 : index
    %19 = vector.load %arg7[%c0_13, %c0_14] : memref<1x16xf32, #tpu.memory_space<vmem>>, vector<1x16xf32>
    %20 = vector.broadcast %19 : vector<1x16xf32> to vector<8x16xf32>
    %21 = arith.addf %18, %20 : vector<8x16xf32>
    %c0_15 = arith.constant 0 : index
    %c0_16 = arith.constant 0 : index
    %22 = vector.load %arg8[%c0_15, %c0_16] : memref<8x16xf32, #tpu.memory_space<vmem>>, vector<8x16xf32>
    tpu.vector_store %arg8[%c0_15, %c0_16], %21 {strides = array<i32>} : memref<8x16xf32, #tpu.memory_space<vmem>>, vector<8x16xf32>,
    return
  }
  func.func @transform_0(%arg0: i32) -> i32 {
    %c0_i32 = arith.constant 0 : i32
    %c0_i32_0 = arith.constant 0 : i32
    return %c0_i32 : i32
  }
  func.func @transform_1(%arg0: i32) -> (i32, i32) {
    %c0_i32 = arith.constant 0 : i32
    %c0_i32_0 = arith.constant 0 : i32
    return %arg0, %c0_i32 : i32, i32
  }
  func.func @transform_2(%arg0: i32) -> (i32, i32) {
    %c0_i32 = arith.constant 0 : i32
    %c0_i32_0 = arith.constant 0 : i32
    %c0_i32_1 = arith.constant 0 : i32
    return %c0_i32, %c0_i32_0 : i32, i32
  }
  func.func @transform_3(%arg0: i32) -> (i32, i32) {
    %c0_i32 = arith.constant 0 : i32
    %c0_i32_0 = arith.constant 0 : i32
    %c0_i32_1 = arith.constant 0 : i32
    return %c0_i32, %c0_i32_0 : i32, i32
  }
  func.func @transform_4(%arg0: i32) -> (i32, i32) {
    %c0_i32 = arith.constant 0 : i32
    %c0_i32_0 = arith.constant 0 : i32
    %c0_i32_1 = arith.constant 0 : i32
    return %c0_i32, %c0_i32_0 : i32, i32
  }
  func.func @transform_5(%arg0: i32) -> (i32, i32) {
    %c0_i32 = arith.constant 0 : i32
    %c0_i32_0 = arith.constant 0 : i32
    %c0_i32_1 = arith.constant 0 : i32
    return %c0_i32, %c0_i32_0 : i32, i32
  }
  func.func @transform_6(%arg0: i32) -> (i32, i32) {
    %c0_i32 = arith.constant 0 : i32
    %c0_i32_0 = arith.constant 0 : i32
    %c0_i32_1 = arith.constant 0 : i32
    return %c0_i32, %c0_i32_0 : i32, i32
  }
  func.func @transform_7(%arg0: i32) -> (i32, i32) {
    %c0_i32 = arith.constant 0 : i32
    %c0_i32_0 = arith.constant 0 : i32
    return %arg0, %c0_i32 : i32, i32
  }
}

</mosaic_0001>

<bundles_post_ra>
// kernel: _dynamic_net_jit.1
= control target key start
LH: loop header
LB: loop body
LE: loop exit
PB: predicated region body
PF: predicated region fallthrough
CT: control target
= control target key end

     0   :  { %13 = vsyncpa [#allocation4], 0  ;;  %s1429_s0 = inlined_call_operand.<no memory space> [shape: s32[1], index: 0, kind: input, shape index: {}]   ;;  %s1430_s1 = inlined_call_operand.hbm [shape: f32[8,32], index: 1, kind: input, shape index: {}]   ;;  %s1431_s2 = inlined_call_operand.vmem [shape: bf16[32,128], index: 2, kind: input, shape index: {}]   ;;  %s1432_s3 = inlined_call_operand.hbm [shape: f32[2,128], index: 3, kind: input, shape index: {}]   ;;  %s1433_s4 = inlined_call_operand.vmem [shape: bf16[128,128], index: 4, kind: input, shape index: {}]   ;;  %s1434_s5 = inlined_call_operand.vmem [shape: bf16[128,16], index: 5, kind: input, shape index: {}]   ;;  %s1435_s6 = inlined_call_operand.vmem [shape: f32[1,16], index: 6, kind: input, shape index: {}]   ;;  %s1436_s7 = inlined_call_operand.hbm [shape: f32[8,16], index: 7, kind: output, shape index: {}]  }
   0x1   :  { %14 = vsyncpa [#allocation7], 0 }
   0x2   :  { %15 = vsyncpa [#allocation5], 0  ;;  %s1131_s24 = smov [#allocation3]   ;;  %s1132_s26 = smov [#allocation6]  }
   0x3   :  { %s24_s25 = sshll.u32 %s1131_s24, 4  ;;  %s36_s27 = sshll.u32 %s1132_s26, 4  ;;  %s25_s25 = int_to_ptr.vmem [resolvable:$true] %s24_s25  ;;  %s37_s27 = int_to_ptr.vmem [resolvable:$true] %s36_s27 }
   0x4   :  { %s1033_s28 = scalar_lea.vmem %s25_s25, 128  ;;  %p1038_p1 = scmp.lt.s32.totalorder %s25_s25, %s25_s25 }
   0x5   :  { %p1034_p0 = scmp.ne.s32.totalorder %s25_s25, %s1033_s28  ;;  %p1039_p2 = scmp.lt.s32.totalorder %s1033_s28, %s1033_s28 }
   0x7   :  { %p1040_p3 = por %p1039_p2, %p1038_p1 }
   0x9   :  { %p1041_p4 = pnand %p1040_p3, %p1034_p0 }
   0xb   :  { %1044 = shalt.err (!%p1041_p4)
}
   0xc   :  { %27 = dma.hbm_to_vmem [thread:$0]  %s1430_s1, 128, %s25_s25, [#allocation4]  }
   0xd   :  { %s1053_s8 = scalar_lea.vmem %s37_s27, 32  ;;  %p1058_p6 = scmp.lt.s32.totalorder %s37_s27, %s37_s27 }
   0xe   :  { %p1054_p5 = scmp.ne.s32.totalorder %s37_s27, %s1053_s8  ;;  %p1059_p7 = scmp.lt.s32.totalorder %s1053_s8, %s1053_s8 }
  0x10   :  { %p1060_p8 = por %p1059_p7, %p1058_p6 }
  0x12   :  { %p1061_p9 = pnand %p1060_p8, %p1054_p5 }
  0x14   :  { %1064 = shalt.err (!%p1061_p9)
}
  0x15   :  { %39 = dma.hbm_to_vmem [thread:$0]  %s1432_s3, 32, %s37_s27, [#allocation7]  }
  0x16   :  { %1105 = dma.done.wait [#allocation4], 128  }
  0x17   :  { %1106 = vsyncadd [#allocation4], 4294967168 }
  0x18   :  { %1107 = dma.done.wait [#allocation7], 32  }
  0x19   :  { %1108 = vsyncadd [#allocation7], 4294967264  ;;  %v1133_v0 = vmov 0.0   ;;  %vm1134_vm0 = vmmov 0   ;;  %v1194_v1 = vld [vmem:[%s1433_s4] sm:$0xf] }
  0x1a   :  { %810 = vmatprep.subr.bf16.mxu0 %v1133_v0  ;;  %814 = vmatprep.mubr.msk.bf16.mxu0 %vm1134_vm0, %v1133_v0  ;;  %v1199_v2 = vld [vmem:[%s1433_s4 + $0x4] sm:$0xf]  ;;  %v1204_v3 = vld [vmem:[%s1433_s4 + $0x8] sm:$0xf]  ;;  %v1209_v4 = vld [vmem:[%s1433_s4 + $0xc] sm:$0xf] }
  0x1b   :  { %v1214_v5 = vld [vmem:[%s1433_s4 + $0x10] sm:$0xf]  ;;  %v1219_v6 = vld [vmem:[%s1433_s4 + $0x14] sm:$0xf]  ;;  %v1224_v7 = vld [vmem:[%s1433_s4 + $0x18] sm:$0xf] }
  0x1c   :  { %v1229_v8 = vld [vmem:[%s1433_s4 + $0x1c] sm:$0xf]  ;;  %v1234_v9 = vld [vmem:[%s1433_s4 + $0x20] sm:$0xf]  ;;  %v1239_v10 = vld [vmem:[%s1433_s4 + $0x24] sm:$0xf] }
  0x1d   :  { %v1244_v11 = vld [vmem:[%s1433_s4 + $0x28] sm:$0xf]  ;;  %v1249_v12 = vld [vmem:[%s1433_s4 + $0x2c] sm:$0xf]  ;;  %v1254_v13 = vld [vmem:[%s1433_s4 + $0x30] sm:$0xf] }
  0x1e   :  { %v1259_v14 = vld [vmem:[%s1433_s4 + $0x34] sm:$0xf]  ;;  %v1264_v15 = vld [vmem:[%s1433_s4 + $0x38] sm:$0xf]  ;;  %v1269_v16 = vld [vmem:[%s1433_s4 + $0x3c] sm:$0xf] }
  0x1f   :  { %v1271_v17 = vld [vmem:[#allocation6 + $0x1] sm:$0x1]  ;;  %v1016_v19 = vld [vmem:[%s1431_s2] sm:$0xff]   ;;  %vm76_vm1 = vcmask 261120   ;;  %p139_p10 = scmp.lt.s32.totalorder %s1429_s0, 2  ;;  %p708_p11 = scmp.ge.s32.totalorder %s1429_s0, 2 }
  0x20   :  { %v1015_v18 = vld [vmem:[%s1431_s2 + $0x8] sm:$0xff]   ;;  %v53_v20 = vld [vmem:[#allocation3] sm:$0xff]  ;;  %v1115_v29 = vmov 0   ;;  %p709_p12 = scmp.ne.s32.totalorder (!%p708_p11), %s1429_s0, 1 }
  0x21   :  { %811 = vmatpush3.bf16.msra.mxu0 %v1015_v18  ;;  %v54_v21 = vpack.c.bf16 %v53_v20, %v53_v20  ;;  %v704_v22 = vld [vmem:[#allocation6] ss:$0 sm:$0xff] }
  0x22   :  { %812 = vmatprep.subr.bf16.mxu0 %v1133_v0 }
  0x25   :  { %813 = vmatpush3.bf16.msra.mxu0 %v1016_v19 }
  0x28   :  { %815 = vmatmul.mubr.msk.bf16.vlgmr.msra.gmra.mxu0 %vm76_vm1, %v54_v21 }
  0xe8   :  { %v114_v23 = vpop.f32.mrf.mxu0 }
  0xe9   :  { %v115_v24 = vadd.f32 %v704_v22, %v114_v23 }
  0xea   :  { %v816_v25 = vpop.f32.mrf.mxu0  ;;  %142 = sbr.rel (%p708_p11) target bundleno = 481 (0x1e1), region = 41 }
  0xeb   :  { %v1283_v26 = vmax.f32 %v115_v24, 0.0 }
  0xec   :  { %v117_v27 = vpop.f32.mrf.mxu0 }
  0xee   :  { %v817_v28 = vpop.f32.mrf.mxu0 }
  0xef   :  { %v1111_v30 = vmov 0   ;;  %146 = sbr.rel (%p709_p12) target bundleno = 476 (0x1dc), region = 45 }
  0xf4   :  { %v717_v31 = vcombine.low %v1264_v15, %v1269_v16  ;;  %v1135_v32 = vmov 0.0   ;;  %v716_v33 = vcombine.low %v1254_v13, %v1259_v14  ;;  %vm1136_vm2 = vmmov 0  }
  0xf5   :  { %818 = vmatprep.subr.bf16.mxu0 %v1135_v32  ;;  %834 = vmatprep.mubr.msk.bf16.mxu0 %vm1136_vm2, %v1135_v32  ;;  %v715_v34 = vcombine.low %v1244_v11, %v1249_v12  ;;  %v714_v35 = vcombine.low %v1234_v9, %v1239_v10  ;;  %v713_v36 = vcombine.low %v1224_v7, %v1229_v8  ;;  %v148_v41 = vlaneseq }
  0xf6   :  { %819 = vmatpush3.bf16.msra.mxu0 %v717_v31  ;;  %v712_v37 = vcombine.low %v1214_v5, %v1219_v6  ;;  %v711_v38 = vcombine.low %v1204_v3, %v1209_v4  ;;  %v710_v39 = vcombine.low %v1194_v1, %v1199_v2  ;;  %v147_v40 = vpack.c.bf16 %v1283_v26, %v1283_v26 }
  0xf7   :  { %820 = vmatprep.subr.bf16.mxu0 %v1135_v32  ;;  %v149_v42 = vshrl.u32 %v148_v41, 7 }
  0xf9   :  { %v150_v43 = vsub.s32 0, %v149_v42 }
  0xfa   :  { %821 = vmatpush3.bf16.msra.mxu0 %v716_v33 }
  0xfb   :  { %822 = vmatprep.subr.bf16.mxu0 %v1135_v32  ;;  %v151_v44 = vrot.slane %v1271_v17, %v150_v43 }
  0xfe   :  { %823 = vmatpush3.bf16.msra.mxu0 %v715_v34 }
  0xff   :  { %824 = vmatprep.subr.bf16.mxu0 %v1135_v32 }
 0x102   :  { %825 = vmatpush3.bf16.msra.mxu0 %v714_v35 }
 0x103   :  { %826 = vmatprep.subr.bf16.mxu0 %v1135_v32 }
 0x106   :  { %827 = vmatpush3.bf16.msra.mxu0 %v713_v36 }
 0x107   :  { %828 = vmatprep.subr.bf16.mxu0 %v1135_v32 }
 0x10a   :  { %829 = vmatpush3.bf16.msra.mxu0 %v712_v37 }
 0x10b   :  { %830 = vmatprep.subr.bf16.mxu0 %v1135_v32 }
 0x10e   :  { %831 = vmatpush3.bf16.msra.mxu0 %v711_v38 }
 0x10f   :  { %832 = vmatprep.subr.bf16.mxu0 %v1135_v32 }
 0x112   :  { %833 = vmatpush3.bf16.msra.mxu0 %v710_v39 }
 0x115   :  { %835 = vmatmul.mubr.bf16.vlgmr.msra.gmra.mxu0 %v147_v40 }
 0x1d5   :  { %v234_v45 = vpop.f32.mrf.mxu0 }
 0x1d6   :  { %v235_v46 = vadd.f32 %v234_v45, %v151_v44 }
 0x1d7   :  { %v836_v47 = vpop.f32.mrf.mxu0 }
 0x1d8   :  { %v240_v30 = vmax.f32 %v235_v46, 0.0  }
 0x1d9   :  { %v237_v48 = vpop.f32.mrf.mxu0 }
 0x1db   :  { %v837_v49 = vpop.f32.mrf.mxu0 }
 0x1dc PF:  { %s959_s28 = scalar_select %p709_p12, 1, 0  ;;  %v1113_v30 = vphi %v1111_v30, %v240_v30  }
 0x1de   :  { %v960_v50 = vstv %s959_s28 }
 0x1df   :  { %vm961_vm3 = vcmp.ne.s32.totalorder %v960_v50, 0 }
 0x1e0   :  { %v962_v29 = vsel %vm961_vm3, %v1283_v26, %v1113_v30  }
 0x1e1 PF:  { %249 = sbr.rel (%p139_p10) target bundleno = 1558 (0x616), region = 53  ;;  %p250_p13 = scmp.eq.s32.totalorder (!%p139_p10), %s1429_s0, 2  ;;  %v1117_v29 = vphi %v1115_v29, %v962_v29  }
 0x1e2   :  { %p718_p0 = scmp.ne.s32.totalorder (!%p139_p10), %s1429_s0, 2 }
 0x1e6   :  { %v1331_v51 = vmov 0   ;;  %253 = sbr.rel (%p718_p0) target bundleno = 922 (0x39a), region = 57 }
 0x1eb   :  { %v726_v52 = vcombine.low %v1264_v15, %v1269_v16  ;;  %v1137_v53 = vmov 0.0   ;;  %v725_v54 = vcombine.low %v1254_v13, %v1259_v14  ;;  %vm1138_vm4 = vmmov 0  }
 0x1ec   :  { %838 = vmatprep.subr.bf16.mxu0 %v1137_v53  ;;  %858 = vmatprep.subr.bf16.mxu1 %v1137_v53  ;;  %v724_v55 = vcombine.low %v1244_v11, %v1249_v12  ;;  %v723_v56 = vcombine.low %v1234_v9, %v1239_v10  ;;  %v722_v57 = vcombine.low %v1224_v7, %v1229_v8  ;;  %v255_v62 = vlaneseq }
 0x1ed   :  { %839 = vmatpush3.bf16.msra.mxu0 %v726_v52  ;;  %854 = vmatprep.mubr.msk.bf16.mxu0 %vm1138_vm4, %v1137_v53  ;;  %v721_v58 = vcombine.low %v1214_v5, %v1219_v6  ;;  %v720_v59 = vcombine.low %v1204_v3, %v1209_v4  ;;  %v719_v60 = vcombine.low %v1194_v1, %v1199_v2 }
 0x1ee   :  { %840 = vmatprep.subr.bf16.mxu0 %v1137_v53  ;;  %859 = vmatpush3.bf16.msra.mxu1 %v726_v52  ;;  %v254_v61 = vpack.c.bf16 %v1283_v26, %v1283_v26  ;;  %v256_v63 = vshrl.u32 %v255_v62, 7 }
 0x1ef   :  { %874 = vmatprep.mubr.msk.bf16.mxu1 %vm1138_vm4, %v1137_v53  ;;  %860 = vmatprep.subr.bf16.mxu1 %v1137_v53 }
 0x1f0   :  { %v257_v18 = vsub.s32 0, %v256_v63 }
 0x1f1   :  { %841 = vmatpush3.bf16.msra.mxu0 %v725_v54 }
 0x1f2   :  { %842 = vmatprep.subr.bf16.mxu0 %v1137_v53  ;;  %861 = vmatpush3.bf16.msra.mxu1 %v725_v54  ;;  %v258_v19 = vrot.slane %v1271_v17, %v257_v18 }
 0x1f3   :  { %862 = vmatprep.subr.bf16.mxu1 %v1137_v53 }
 0x1f5   :  { %843 = vmatpush3.bf16.msra.mxu0 %v724_v55 }
 0x1f6   :  { %844 = vmatprep.subr.bf16.mxu0 %v1137_v53  ;;  %863 = vmatpush3.bf16.msra.mxu1 %v724_v55 }
 0x1f7   :  { %864 = vmatprep.subr.bf16.mxu1 %v1137_v53 }
 0x1f9   :  { %845 = vmatpush3.bf16.msra.mxu0 %v723_v56 }
 0x1fa   :  { %846 = vmatprep.subr.bf16.mxu0 %v1137_v53  ;;  %865 = vmatpush3.bf16.msra.mxu1 %v723_v56 }
 0x1fb   :  { %866 = vmatprep.subr.bf16.mxu1 %v1137_v53 }
 0x1fd   :  { %847 = vmatpush3.bf16.msra.mxu0 %v722_v57 }
 0x1fe   :  { %848 = vmatprep.subr.bf16.mxu0 %v1137_v53  ;;  %867 = vmatpush3.bf16.msra.mxu1 %v722_v57 }
 0x1ff   :  { %868 = vmatprep.subr.bf16.mxu1 %v1137_v53 }
 0x201   :  { %849 = vmatpush3.bf16.msra.mxu0 %v721_v58 }
 0x202   :  { %850 = vmatprep.subr.bf16.mxu0 %v1137_v53  ;;  %869 = vmatpush3.bf16.msra.mxu1 %v721_v58 }
 0x203   :  { %870 = vmatprep.subr.bf16.mxu1 %v1137_v53 }
 0x205   :  { %851 = vmatpush3.bf16.msra.mxu0 %v720_v59 }
 0x206   :  { %852 = vmatprep.subr.bf16.mxu0 %v1137_v53  ;;  %871 = vmatpush3.bf16.msra.mxu1 %v720_v59 }
 0x207   :  { %872 = vmatprep.subr.bf16.mxu1 %v1137_v53 }
 0x209   :  { %853 = vmatpush3.bf16.msra.mxu0 %v719_v60 }
 0x20a   :  { %873 = vmatpush3.bf16.msra.mxu1 %v719_v60 }
 0x20c   :  { %855 = vmatmul.mubr.bf16.vlgmr.msra.gmra.mxu0 %v254_v61 }
 0x2cc   :  { %v341_v20 = vpop.f32.mrf.mxu0 }
 0x2cd   :  { %v342_v21 = vadd.f32 %v341_v20, %v258_v19 }
 0x2ce   :  { %v856_v22 = vpop.f32.mrf.mxu0 }
 0x2cf   :  { %v347_v23 = vmax.f32 %v342_v21, 0.0 }
 0x2d0   :  { %v344_v24 = vpop.f32.mrf.mxu0 }
 0x2d1   :  { %v348_v25 = vpack.c.bf16 %v347_v23, %v347_v23 }
 0x2d2   :  { %v857_v27 = vpop.f32.mrf.mxu0 }
 0x2d3   :  { %875 = vmatmul.mubr.bf16.vlgmr.msra.gmra.mxu1 %v348_v25 }
 0x393   :  { %v383_v28 = vpop.f32.mrf.mxu1 }
 0x394   :  { %v384_v29 = vadd.f32 %v383_v28, %v258_v19 }
 0x395   :  { %v876_v30 = vpop.f32.mrf.mxu1 }
 0x396   :  { %v389_v51 = vmax.f32 %v384_v29, 0.0  }
 0x397   :  { %v386_v31 = vpop.f32.mrf.mxu1 }
 0x399   :  { %v877_v32 = vpop.f32.mrf.mxu1 }
 0x39a PF:  { %393 = sbr.rel (%p250_p13) target bundleno = 1557 (0x615), region = 61  ;;  %v1121_v51 = vphi %v1331_v51, %v389_v51  }
 0x39f   :  { %v734_v33 = vcombine.low %v1264_v15, %v1269_v16  ;;  %v1139_v34 = vmov 0.0   ;;  %v733_v35 = vcombine.low %v1254_v13, %v1259_v14  ;;  %vm1140_vm5 = vmmov 0  }
 0x3a0   :  { %878 = vmatprep.subr.bf16.mxu0 %v1139_v34  ;;  %898 = vmatprep.subr.bf16.mxu1 %v1139_v34  ;;  %v732_v36 = vcombine.low %v1244_v11, %v1249_v12  ;;  %v731_v13 = vcombine.low %v1234_v9, %v1239_v10  ;;  %v730_v14 = vcombine.low %v1224_v7, %v1229_v8 }
 0x3a1   :  { %879 = vmatpush3.bf16.msra.mxu0 %v734_v33  ;;  %894 = vmatprep.mubr.msk.bf16.mxu0 %vm1140_vm5, %v1139_v34  ;;  %v729_v11 = vcombine.low %v1214_v5, %v1219_v6  ;;  %v728_v9 = vcombine.low %v1204_v3, %v1209_v4  ;;  %v727_v7 = vcombine.low %v1194_v1, %v1199_v2  ;;  %v395_v1 = vlaneseq }
 0x3a2   :  { %880 = vmatprep.subr.bf16.mxu0 %v1139_v34  ;;  %899 = vmatpush3.bf16.msra.mxu1 %v734_v33  ;;  %v394_v8 = vpack.c.bf16 %v1283_v26, %v1283_v26 }
 0x3a3   :  { %914 = vmatprep.mubr.msk.bf16.mxu1 %vm1140_vm5, %v1139_v34  ;;  %900 = vmatprep.subr.bf16.mxu1 %v1139_v34  ;;  %v396_v2 = vshrl.u32 %v395_v1, 7 }
 0x3a5   :  { %881 = vmatpush3.bf16.msra.mxu0 %v733_v35  ;;  %v397_v3 = vsub.s32 0, %v396_v2 }
 0x3a6   :  { %882 = vmatprep.subr.bf16.mxu0 %v1139_v34  ;;  %901 = vmatpush3.bf16.msra.mxu1 %v733_v35 }
 0x3a7   :  { %902 = vmatprep.subr.bf16.mxu1 %v1139_v34  ;;  %v398_v4 = vrot.slane %v1271_v17, %v397_v3 }
 0x3a9   :  { %883 = vmatpush3.bf16.msra.mxu0 %v732_v36 }
 0x3aa   :  { %884 = vmatprep.subr.bf16.mxu0 %v1139_v34  ;;  %903 = vmatpush3.bf16.msra.mxu1 %v732_v36 }
 0x3ab   :  { %904 = vmatprep.subr.bf16.mxu1 %v1139_v34 }
 0x3ad   :  { %885 = vmatpush3.bf16.msra.mxu0 %v731_v13 }
 0x3ae   :  { %886 = vmatprep.subr.bf16.mxu0 %v1139_v34  ;;  %905 = vmatpush3.bf16.msra.mxu1 %v731_v13 }
 0x3af   :  { %906 = vmatprep.subr.bf16.mxu1 %v1139_v34 }
 0x3b1   :  { %887 = vmatpush3.bf16.msra.mxu0 %v730_v14 }
 0x3b2   :  { %888 = vmatprep.subr.bf16.mxu0 %v1139_v34  ;;  %907 = vmatpush3.bf16.msra.mxu1 %v730_v14 }
 0x3b3   :  { %908 = vmatprep.subr.bf16.mxu1 %v1139_v34 }
 0x3b5   :  { %889 = vmatpush3.bf16.msra.mxu0 %v729_v11 }
 0x3b6   :  { %890 = vmatprep.subr.bf16.mxu0 %v1139_v34  ;;  %909 = vmatpush3.bf16.msra.mxu1 %v729_v11 }
 0x3b7   :  { %910 = vmatprep.subr.bf16.mxu1 %v1139_v34 }
 0x3b9   :  { %891 = vmatpush3.bf16.msra.mxu0 %v728_v9 }
 0x3ba   :  { %892 = vmatprep.subr.bf16.mxu0 %v1139_v34  ;;  %911 = vmatpush3.bf16.msra.mxu1 %v728_v9 }
 0x3bb   :  { %912 = vmatprep.subr.bf16.mxu1 %v1139_v34 }
 0x3bd   :  { %893 = vmatpush3.bf16.msra.mxu0 %v727_v7 }
 0x3be   :  { %918 = vmatprep.subr.bf16.mxu0 %v1139_v34  ;;  %913 = vmatpush3.bf16.msra.mxu1 %v727_v7 }
 0x3c0   :  { %895 = vmatmul.mubr.bf16.vlgmr.msra.gmra.mxu0 %v394_v8 }
 0x3c1   :  { %919 = vmatpush3.bf16.msra.mxu0 %v734_v33  ;;  %934 = vmatprep.mubr.msk.bf16.mxu0 %vm1140_vm5, %v1139_v34 }
 0x3c2   :  { %920 = vmatprep.subr.bf16.mxu0 %v1139_v34 }
 0x3c5   :  { %921 = vmatpush3.bf16.msra.mxu0 %v733_v35 }
 0x3c6   :  { %922 = vmatprep.subr.bf16.mxu0 %v1139_v34 }
 0x3c9   :  { %923 = vmatpush3.bf16.msra.mxu0 %v732_v36 }
 0x3ca   :  { %924 = vmatprep.subr.bf16.mxu0 %v1139_v34 }
 0x3cd   :  { %925 = vmatpush3.bf16.msra.mxu0 %v731_v13 }
 0x3ce   :  { %926 = vmatprep.subr.bf16.mxu0 %v1139_v34 }
 0x3d1   :  { %927 = vmatpush3.bf16.msra.mxu0 %v730_v14 }
 0x3d2   :  { %928 = vmatprep.subr.bf16.mxu0 %v1139_v34 }
 0x3d5   :  { %929 = vmatpush3.bf16.msra.mxu0 %v729_v11 }
 0x3d6   :  { %930 = vmatprep.subr.bf16.mxu0 %v1139_v34 }
 0x3d9   :  { %931 = vmatpush3.bf16.msra.mxu0 %v728_v9 }
 0x3da   :  { %932 = vmatprep.subr.bf16.mxu0 %v1139_v34 }
 0x3dd   :  { %933 = vmatpush3.bf16.msra.mxu0 %v727_v7 }
 0x480   :  { %v481_v5 = vpop.f32.mrf.mxu0 }
 0x481   :  { %v482_v6 = vadd.f32 %v481_v5, %v398_v4 }
 0x482   :  { %v896_v10 = vpop.f32.mrf.mxu0 }
 0x483   :  { %v487_v12 = vmax.f32 %v482_v6, 0.0 }
 0x484   :  { %v484_v15 = vpop.f32.mrf.mxu0 }
 0x485   :  { %v488_v16 = vpack.c.bf16 %v487_v12, %v487_v12 }
 0x486   :  { %v897_v26 = vpop.f32.mrf.mxu0 }
 0x487   :  { %915 = vmatmul.mubr.bf16.vlgmr.msra.gmra.mxu1 %v488_v16 }
 0x547   :  { %v523_v37 = vpop.f32.mrf.mxu1 }
 0x548   :  { %v524_v38 = vadd.f32 %v523_v37, %v398_v4 }
 0x549   :  { %v916_v39 = vpop.f32.mrf.mxu1 }
 0x54a   :  { %v529_v40 = vmax.f32 %v524_v38, 0.0 }
 0x54b   :  { %v526_v41 = vpop.f32.mrf.mxu1 }
 0x54c   :  { %v530_v42 = vpack.c.bf16 %v529_v40, %v529_v40 }
 0x54d   :  { %v917_v43 = vpop.f32.mrf.mxu1 }
 0x54e   :  { %935 = vmatmul.mubr.bf16.vlgmr.msra.gmra.mxu0 %v530_v42 }
 0x60e   :  { %v565_v44 = vpop.f32.mrf.mxu0 }
 0x60f   :  { %v566_v45 = vadd.f32 %v565_v44, %v398_v4 }
 0x610   :  { %v936_v46 = vpop.f32.mrf.mxu0 }
 0x611   :  { %v571_v51 = vmax.f32 %v566_v45, 0.0  }
 0x612   :  { %v568_v17 = vpop.f32.mrf.mxu0 }
 0x614   :  { %v937_v47 = vpop.f32.mrf.mxu0 }
 0x615 PF:  { %v1437_v29 = vmov %v1125_v51  ;;  %v1125_v51 = vphi %v1121_v51, %v571_v51  }
 0x616 PF:  { %938 = vmatprep.subr.bf16.mxu0 %v1133_v0  ;;  %v1017_v48 = vld [vmem:[%s1434_s5 + $0x38] sm:$0xff]   ;;  %954 = vmatprep.mubr.msk.bf16.mxu0 %vm1134_vm0, %v1133_v0  ;;  %v1018_v49 = vld [vmem:[%s1434_s5 + $0x30] sm:$0xff]   ;;  %v1019_v50 = vld [vmem:[%s1434_s5 + $0x28] sm:$0xff]   ;;  %v574_v56 = vpack.c.bf16 %v1129_v29, %v1129_v29  ;;  %s1141_s27 = smov [#allocation8]   ;;  %vm686_vm6 = vcmask 130048   ;;  %v1129_v29 = vphi %v1117_v29, %v1437_v29  }
 0x617   :  { %939 = vmatpush3.bf16.msra.mxu0 %v1017_v48  ;;  %v1020_v51 = vld [vmem:[%s1434_s5 + $0x20] sm:$0xff]   ;;  %v1021_v52 = vld [vmem:[%s1434_s5 + $0x18] sm:$0xff]   ;;  %v1022_v53 = vld [vmem:[%s1434_s5 + $0x10] sm:$0xff]   ;;  %s694_s28 = sshll.u32 %s1141_s27, 4  ;;  %s695_s28 = int_to_ptr.vmem [resolvable:$true] %s694_s28 }
 0x618   :  { %940 = vmatprep.subr.bf16.mxu0 %v1133_v0  ;;  %v1023_v54 = vld [vmem:[%s1434_s5 + $0x8] sm:$0xff]   ;;  %v1024_v55 = vld [vmem:[%s1434_s5] sm:$0xff]   ;;  %s1065_s29 = scalar_lea.vmem %s695_s28, 128  ;;  %p1070_p2 = scmp.lt.s32.totalorder %s695_s28, %s695_s28 }
 0x619   :  { %v735_v57 = vld [vmem:[%s1435_s6] ss:$0 sm:$0xff]  ;;  %p1066_p1 = scmp.ne.s32.totalorder %s695_s28, %s1065_s29  ;;  %p1071_p3 = scmp.lt.s32.totalorder %s1065_s29, %s1065_s29 }
 0x61b   :  { %941 = vmatpush3.bf16.msra.mxu0 %v1018_v49  ;;  %p1072_p4 = por %p1071_p3, %p1070_p2 }
 0x61c   :  { %942 = vmatprep.subr.bf16.mxu0 %v1133_v0 }
 0x61d   :  { %p1073_p5 = pnand %p1072_p4, %p1066_p1 }
 0x61f   :  { %943 = vmatpush3.bf16.msra.mxu0 %v1019_v50 }
 0x620   :  { %944 = vmatprep.subr.bf16.mxu0 %v1133_v0 }
 0x623   :  { %945 = vmatpush3.bf16.msra.mxu0 %v1020_v51 }
 0x624   :  { %946 = vmatprep.subr.bf16.mxu0 %v1133_v0 }
 0x627   :  { %947 = vmatpush3.bf16.msra.mxu0 %v1021_v52 }
 0x628   :  { %948 = vmatprep.subr.bf16.mxu0 %v1133_v0 }
 0x62b   :  { %949 = vmatpush3.bf16.msra.mxu0 %v1022_v53 }
 0x62c   :  { %950 = vmatprep.subr.bf16.mxu0 %v1133_v0 }
 0x62f   :  { %951 = vmatpush3.bf16.msra.mxu0 %v1023_v54 }
 0x630   :  { %952 = vmatprep.subr.bf16.mxu0 %v1133_v0 }
 0x633   :  { %953 = vmatpush3.bf16.msra.mxu0 %v1024_v55 }
 0x636   :  { %955 = vmatmul.mubr.bf16.vlgmr.msra.gmra.mxu0 %v574_v56 }
 0x6f6   :  { %v680_v58 = vpop.f32.mrf.mxu0 }
 0x6f7   :  { %v681_v59 = vadd.f32 %v735_v57, %v680_v58 }
 0x6f8   :  { %v956_v60 = vpop.f32.mrf.mxu0 }
 0x6f9   :  { %687 = vst.msk [vmem:[#allocation8] sm:$0xff] %vm686_vm6, %v681_v59 }
 0x6fa   :  { %v683_v61 = vpop.f32.mrf.mxu0 }
 0x6fb   :  { %1076 = shalt.err (!%p1073_p5)
}
 0x6fc   :  { %697 = dma.vmem_to_hbm [thread:$0]  %s695_s28, 128, %s1436_s7, [#allocation5]   ;;  %v957_v0 = vpop.f32.mrf.mxu0 }
 0x6fd   :  { %1109 = dma.done.wait [#allocation5], 128  }
 0x6fe   :  { %1110 = vsyncadd [#allocation5], 4294967168 }
 0x6ff   :  { %701 = vsyncpa [#allocation4], 1 }
 0x700   :  { %702 = vsyncpa [#allocation7], 1 }
 0x701   :  { %703 = vsyncpa [#allocation5], 1 }

</bundles_post_ra>
